<compile_context>
chip_gen: v7x
topology: tpu7x:2x2x1
jax: 0.10.0
libtpu: 0.0.40
codegen_flags: <defaults>
</compile_context>

<pallas_src>
import functools

import jax
import jax.numpy as jnp
from jax import lax
from jax.experimental import pallas as pl
from jax.experimental.pallas import tpu as pltpu

_LANE = 128


def _round_up(x: int, m: int) -> int:
    return ((x + m - 1) // m) * m


def _mse_kernel(em_ref, a_ref, ag_ref, out_ref, *,
                tile_rows: int, chunk_rows: int, valid_rows: int,
                inv_count: float):
    c = pl.program_id(0)            # core-split index ("parallel")
    i = pl.program_id(1)            # reduction step ("arbitrary")
    n_i = pl.num_programs(1)

    @pl.when(i == 0)
    def _init():
        # out block index is constant across the reduction axis -> VMEM-resident.
        out_ref[...] = jnp.zeros_like(out_ref)

    tile_idx = c * n_i + i
    row0 = tile_idx * tile_rows
    n_chunks = tile_rows // chunk_rows
    folds = chunk_rows // 8

    def _accumulate(masked: bool):
        def chunk_fn(j, acc):
            r = pl.multiple_of(j * chunk_rows, chunk_rows)
            # Upcast in-kernel (VPU, hidden under DMA); inputs stay narrow in HBM.
            em = em_ref[pl.ds(r, chunk_rows), :].astype(jnp.float32)
            a = a_ref[pl.ds(r, chunk_rows), :].astype(jnp.float32)
            ag = ag_ref[pl.ds(r, chunk_rows), :].astype(jnp.float32)
            d = em - jnp.abs(a - ag)
            sq = d * d
            if masked:
                # Only the last / clamped tile pays for the iota + select.
                rid = row0 + r + lax.broadcasted_iota(
                    jnp.int32, (chunk_rows, _LANE), 0)
                sq = jnp.where(rid < valid_rows, sq, 0.0)
            if folds > 1:
                # Sublane-aligned fold (chunk_rows,128) -> (8,128): plain vreg adds.
                sq = jnp.sum(sq.reshape(folds, 8, _LANE), axis=0)
            return acc + sq

        acc = lax.fori_loop(0, n_chunks, chunk_fn,
                            jnp.zeros((8, _LANE), jnp.float32),
                            unroll=min(n_chunks, 8))
        out_ref[...] += acc

    interior = row0 + tile_rows <= valid_rows

    @pl.when(interior)
    def _fast():
        _accumulate(False)

    @pl.when(jnp.logical_not(interior))
    def _edge():
        _accumulate(True)

    @pl.when(i == n_i - 1)
    def _finalize():
        out_ref[...] = out_ref[...] * inv_count


def error_map_loss(error_map: jax.Array,
                   alpha: jax.Array,
                   alpha_ground: jax.Array,
                   *,
                   max_tile_rows: int | None = None,
                   num_splits: int | None = None) -> jax.Array:
    """mean((error_map - |alpha - alpha_ground|)^2), computed as a Pallas kernel."""
    assert error_map.shape == alpha.shape == alpha_ground.shape
    total = error_map.size
    assert total > 0

    inputs = (error_map, alpha, alpha_ground)

    # Sublane packing requirement per dtype width (f32:8, bf16:16, int8/fp8:32).
    def _sub(dt):
        return {4: 8, 2: 16, 1: 32}.get(jnp.dtype(dt).itemsize, 8)

    sub = max(_sub(x.dtype) for x in inputs)
    itemsize = max(jnp.dtype(x.dtype).itemsize for x in inputs)

    padded = _round_up(total, _LANE)
    rows = padded // _LANE

    def _prep(x):
        xf = x.reshape(-1)                       # free bitcast of contiguous data
        if padded != total:
            # TODO(synk): for non-128-aligned totals this pad copies all three
            # inputs once; an in-kernel flat-element tail mask would avoid it.
            xf = jnp.pad(xf, (0, padded - total))
        return xf.reshape(rows, _LANE)

    em2, a2, ag2 = (_prep(x) for x in inputs)

    # Generation awareness (best-effort): v7x has 2 TensorCores and ~3.2 TB/s
    # HBM, so it wants a 2-way split and bigger per-step tiles.
    try:
        kind = jax.devices()[0].device_kind.lower()
    except Exception:  # pragma: no cover
        kind = ""
    is_v7 = "v7" in kind

    # Tile sizing: ~2 MiB per input per pipeline buffer (4 MiB on v7x) =>
    # 12-24 MiB of double-buffered input DMA per step, amortizing the ~0.35 us
    # fixed grid-step overhead while staying well under the scoped-VMEM limit.
    per_buf_bytes = (4 if is_v7 else 2) * 1024 * 1024
    budget_rows = max(sub, per_buf_bytes // (_LANE * itemsize))

    tile_rows = budget_rows
    if max_tile_rows is not None:
        tile_rows = min(tile_rows, max_tile_rows)
    tile_rows = min(tile_rows, _round_up(rows, sub))
    tile_rows = max(sub, (tile_rows // sub) * sub)

    # Chunk: largest sublane-aligned slab (<=128 rows) dividing the tile; keeps
    # the squared-diff live range small instead of materializing the full tile.
    chunk_rows = tile_rows
    for cand in (128, 64, 32, 16, 8):
        if sub <= cand <= tile_rows and tile_rows % cand == 0:
            chunk_rows = cand
            break

    num_tiles = -(-rows // tile_rows)
    if num_splits is None:
        num_splits = 2 if is_v7 else 1   # single-TC chips: split is pure overhead
    n_splits = num_splits if num_tiles >= num_splits else 1
    steps_per_split = -(-num_tiles // n_splits)

    def in_map(c, i):
        # Clamp so an uneven split never indexes past the last block; the
        # duplicate tile is fully masked (row_ids >= valid_rows) in the kernel.
        return (jnp.minimum(c * steps_per_split + i, num_tiles - 1), 0)

    kernel = functools.partial(
        _mse_kernel,
        tile_rows=tile_rows,
        chunk_rows=chunk_rows,
        valid_rows=rows,
        inv_count=1.0 / float(total),
    )

    in_spec = pl.BlockSpec((tile_rows, _LANE), in_map)
    vmem_limit = (40 if is_v7 else 32) * 1024 * 1024

    # TODO(synk): on v7x verify the leading "parallel" axis actually shards
    # across both TensorCores; if not, switch that axis to pltpu.CORE_PARALLEL.
    partials = pl.pallas_call(
        kernel,
        out_shape=jax.ShapeDtypeStruct((n_splits * 8, _LANE), jnp.float32),
        grid_spec=pltpu.PrefetchScalarGridSpec(
            num_scalar_prefetch=0,
            grid=(n_splits, steps_per_split),
            in_specs=[in_spec, in_spec, in_spec],
            out_specs=pl.BlockSpec((8, _LANE), lambda c, i: (c, 0)),
        ),
        compiler_params=pltpu.CompilerParams(
            dimension_semantics=("parallel", "arbitrary"),
            vmem_limit_bytes=vmem_limit),
    )(em2, a2, ag2)

    # Tiny final cross-lane / cross-split reduction (<= n_splits * 8 * 128 f32).
    return jnp.sum(partials)


def _reference(error_map, alpha, alpha_ground):
    return jnp.mean(jnp.square(error_map.astype(jnp.float32)
                               - jnp.abs(alpha.astype(jnp.float32)
                                         - alpha_ground.astype(jnp.float32))))


if __name__ == "__main__":
    # Case 1: small NCHW tensors, 128-aligned flat size (no pad path).
    k1, k2, k3 = jax.random.split(jax.random.PRNGKey(0), 3)
    shape = (2, 1, 32, 32)
    error_map = jax.random.uniform(k1, shape, jnp.float32)
    alpha = jax.random.uniform(k2, shape, jnp.float32)
    alpha_ground = jax.random.uniform(k3, shape, jnp.float32)

    loss = jax.block_until_ready(error_map_loss(error_map, alpha, alpha_ground))
    ref = jax.block_until_ready(_reference(error_map, alpha, alpha_ground))
    assert jnp.allclose(loss, ref, rtol=1e-5, atol=1e-6), (loss, ref)

    # Case 2: non-128-aligned size + tiny tiles: multi-step grid, 2-way split
    # with an uneven tile count (clamped duplicate tile), ragged last block,
    # and the masked edge path.
    k4, k5, k6 = jax.random.split(jax.random.PRNGKey(1), 3)
    shape2 = (1, 1, 68, 68)   # 4624 elems -> 37 rows -> 5 tiles of 8 rows
    em2 = jax.random.normal(k4, shape2, jnp.float32)
    a2 = jax.random.uniform(k5, shape2, jnp.float32)
    ag2 = jax.random.uniform(k6, shape2, jnp.float32)

    loss2 = jax.block_until_ready(
        error_map_loss(em2, a2, ag2, max_tile_rows=8, num_splits=2))
    ref2 = jax.block_until_ready(_reference(em2, a2, ag2))
    assert jnp.allclose(loss2, ref2, rtol=1e-5, atol=1e-6), (loss2, ref2)

    # Case 3: multi-chunk fori_loop path (tile_rows=256 -> 2 chunks of 128 rows)
    # over a 3-step reduction grid.
    k7, k8, k9 = jax.random.split(jax.random.PRNGKey(2), 3)
    shape3 = (2, 3, 128, 128)  # 98304 elems -> 768 rows -> 3 tiles of 256 rows
    em3 = jax.random.normal(k7, shape3, jnp.float32)
    a3 = jax.random.uniform(k8, shape3, jnp.float32)
    ag3 = jax.random.uniform(k9, shape3, jnp.float32)

    loss3 = jax.block_until_ready(error_map_loss(em3, a3, ag3, max_tile_rows=256))
    ref3 = jax.block_until_ready(_reference(em3, a3, ag3))
    assert jnp.allclose(loss3, ref3, rtol=1e-5, atol=1e-6), (loss3, ref3)

    print("KERNEL_OK")
</pallas_src>

<mosaic_0001>
module attributes {stable_mosaic.version = 11 : i64} {
  func.func @_mse_kernel(%arg0: i32, %arg1: i32, %arg2: memref<16x128xf32, #tpu.memory_space<vmem>>, %arg3: memref<16x128xf32, #tpu.memory_space<vmem>>, %arg4: memref<16x128xf32, #tpu.memory_space<vmem>>, %arg5: memref<8x128xf32, #tpu.memory_space<vmem>>) attributes {dimension_semantics = [#tpu.dimension_semantics<parallel>, #tpu.dimension_semantics<arbitrary>], iteration_bounds = array<i64: 1, 1>, scalar_prefetch = 0 : i64, scratch_operands = 0 : i64, tpu.core_type = #tpu.core_type<tc>, window_params = [{transform_indices = @transform_0, window_bounds = array<i64: 16, 128>}, {transform_indices = @transform_1, window_bounds = array<i64: 16, 128>}, {transform_indices = @transform_2, window_bounds = array<i64: 16, 128>}, {transform_indices = @transform_3, window_bounds = array<i64: 8, 128>}]} {
    %c0_i32 = arith.constant 0 : i32
    %0 = arith.cmpi eq, %arg1, %c0_i32 : i32
    %1 = arith.extui %0 : i1 to i32
    %c0_i32_0 = arith.constant 0 : i32
    %2 = arith.cmpi ne, %1, %c0_i32_0 : i32
    scf.if %2 {
      %cst = arith.constant 0.000000e+00 : f32
      %16 = vector.broadcast %cst : f32 to vector<8x128xf32>
      %c0 = arith.constant 0 : index
      %c0_7 = arith.constant 0 : index
      %17 = vector.load %arg5[%c0, %c0_7] : memref<8x128xf32, #tpu.memory_space<vmem>>, vector<8x128xf32>
      tpu.vector_store %arg5[%c0, %c0_7], %16 {strides = array<i32>} : memref<8x128xf32, #tpu.memory_space<vmem>>, vector<8x128xf32>,
    } else {
    }
    %c1_i32 = arith.constant 1 : i32
    %3 = arith.muli %arg0, %c1_i32 : i32
    %4 = arith.addi %3, %arg1 : i32
    %c16_i32 = arith.constant 16 : i32
    %5 = arith.muli %4, %c16_i32 : i32
    %c16_i32_1 = arith.constant 16 : i32
    %6 = arith.addi %5, %c16_i32_1 : i32
    %c16_i32_2 = arith.constant 16 : i32
    %7 = arith.cmpi sle, %6, %c16_i32_2 : i32
    %8 = arith.extui %7 : i1 to i32
    %c0_i32_3 = arith.constant 0 : i32
    %9 = arith.cmpi ne, %8, %c0_i32_3 : i32
    scf.if %9 {
      %cst = arith.constant 0.000000e+00 : f32
      %16 = vector.broadcast %cst : f32 to vector<8x128xf32>
      %c0_i32_7 = arith.constant 0 : i32
      %c16_i32_8 = arith.constant 16 : i32
      %17 = arith.muli %c0_i32_7, %c16_i32_8 : i32
      %18 = tpu.assume_multiple %17, 16 : i32
      %19 = arith.index_cast %18 : i32 to index
      %c0 = arith.constant 0 : index
      %20 = vector.load %arg2[%19, %c0] : memref<16x128xf32, #tpu.memory_space<vmem>>, vector<16x128xf32>
      %21 = arith.index_cast %18 : i32 to index
      %c0_9 = arith.constant 0 : index
      %22 = vector.load %arg3[%21, %c0_9] : memref<16x128xf32, #tpu.memory_space<vmem>>, vector<16x128xf32>
      %23 = arith.index_cast %18 : i32 to index
      %c0_10 = arith.constant 0 : index
      %24 = vector.load %arg4[%23, %c0_10] : memref<16x128xf32, #tpu.memory_space<vmem>>, vector<16x128xf32>
      %25 = arith.subf %22, %24 : vector<16x128xf32>
      %26 = math.absf %25 : vector<16x128xf32>
      %27 = arith.subf %20, %26 : vector<16x128xf32>
      %28 = arith.mulf %27, %27 : vector<16x128xf32>
      %29 = vector.shape_cast %28 : vector<16x128xf32> to vector<2x8x128xf32>
      %cst_11 = arith.constant dense<0.000000e+00> : vector<8x128xf32>
      %30 = vector.multi_reduction <add>, %29, %cst_11 [0] : vector<2x8x128xf32> to vector<8x128xf32>
      %31 = arith.addf %16, %30 : vector<8x128xf32>
      %c1_i32_12 = arith.constant 1 : i32
      %c0_13 = arith.constant 0 : index
      %c0_14 = arith.constant 0 : index
      %32 = vector.load %arg5[%c0_13, %c0_14] : memref<8x128xf32, #tpu.memory_space<vmem>>, vector<8x128xf32>
      %33 = arith.addf %32, %31 : vector<8x128xf32>
      %c0_15 = arith.constant 0 : index
      %c0_16 = arith.constant 0 : index
      %34 = vector.load %arg5[%c0_15, %c0_16] : memref<8x128xf32, #tpu.memory_space<vmem>>, vector<8x128xf32>
      tpu.vector_store %arg5[%c0_15, %c0_16], %33 {strides = array<i32>} : memref<8x128xf32, #tpu.memory_space<vmem>>, vector<8x128xf32>,
    } else {
    }
    %true = arith.constant true
    %10 = arith.xori %7, %true : i1
    %11 = arith.extui %10 : i1 to i32
    %c0_i32_4 = arith.constant 0 : i32
    %12 = arith.cmpi ne, %11, %c0_i32_4 : i32
    scf.if %12 {
      %cst = arith.constant 0.000000e+00 : f32
      %16 = vector.broadcast %cst : f32 to vector<8x128xf32>
      %c0_i32_7 = arith.constant 0 : i32
      %c16_i32_8 = arith.constant 16 : i32
      %17 = arith.muli %c0_i32_7, %c16_i32_8 : i32
      %18 = tpu.assume_multiple %17, 16 : i32
      %19 = arith.index_cast %18 : i32 to index
      %c0 = arith.constant 0 : index
      %20 = vector.load %arg2[%19, %c0] : memref<16x128xf32, #tpu.memory_space<vmem>>, vector<16x128xf32>
      %21 = arith.index_cast %18 : i32 to index
      %c0_9 = arith.constant 0 : index
      %22 = vector.load %arg3[%21, %c0_9] : memref<16x128xf32, #tpu.memory_space<vmem>>, vector<16x128xf32>
      %23 = arith.index_cast %18 : i32 to index
      %c0_10 = arith.constant 0 : index
      %24 = vector.load %arg4[%23, %c0_10] : memref<16x128xf32, #tpu.memory_space<vmem>>, vector<16x128xf32>
      %25 = arith.subf %22, %24 : vector<16x128xf32>
      %26 = math.absf %25 : vector<16x128xf32>
      %27 = arith.subf %20, %26 : vector<16x128xf32>
      %28 = arith.mulf %27, %27 : vector<16x128xf32>
      %29 = arith.addi %5, %18 : i32
      %30 = tpu.iota {dimensions = array<i32: 0>} : vector<16x128xi32>
      %31 = vector.broadcast %29 : i32 to vector<16x128xi32>
      %32 = arith.addi %31, %30 : vector<16x128xi32>
      %c16_i32_11 = arith.constant 16 : i32
      %33 = vector.broadcast %c16_i32_11 : i32 to vector<16x128xi32>
      %34 = arith.cmpi slt, %32, %33 : vector<16x128xi32>
      %cst_12 = arith.constant 0.000000e+00 : f32
      %35 = vector.broadcast %cst_12 : f32 to vector<16x128xf32>
      %36 = arith.select %34, %28, %35 : vector<16x128xi1>, vector<16x128xf32>
      %37 = vector.shape_cast %36 : vector<16x128xf32> to vector<2x8x128xf32>
      %cst_13 = arith.constant dense<0.000000e+00> : vector<8x128xf32>
      %38 = vector.multi_reduction <add>, %37, %cst_13 [0] : vector<2x8x128xf32> to vector<8x128xf32>
      %39 = arith.addf %16, %38 : vector<8x128xf32>
      %c1_i32_14 = arith.constant 1 : i32
      %c0_15 = arith.constant 0 : index
      %c0_16 = arith.constant 0 : index
      %40 = vector.load %arg5[%c0_15, %c0_16] : memref<8x128xf32, #tpu.memory_space<vmem>>, vector<8x128xf32>
      %41 = arith.addf %40, %39 : vector<8x128xf32>
      %c0_17 = arith.constant 0 : index
      %c0_18 = arith.constant 0 : index
      %42 = vector.load %arg5[%c0_17, %c0_18] : memref<8x128xf32, #tpu.memory_space<vmem>>, vector<8x128xf32>
      tpu.vector_store %arg5[%c0_17, %c0_18], %41 {strides = array<i32>} : memref<8x128xf32, #tpu.memory_space<vmem>>, vector<8x128xf32>,
    } else {
    }
    %c0_i32_5 = arith.constant 0 : i32
    %13 = arith.cmpi eq, %arg1, %c0_i32_5 : i32
    %14 = arith.extui %13 : i1 to i32
    %c0_i32_6 = arith.constant 0 : i32
    %15 = arith.cmpi ne, %14, %c0_i32_6 : i32
    scf.if %15 {
      %c0 = arith.constant 0 : index
      %c0_7 = arith.constant 0 : index
      %16 = vector.load %arg5[%c0, %c0_7] : memref<8x128xf32, #tpu.memory_space<vmem>>, vector<8x128xf32>
      %cst = arith.constant 4.8828125E-4 : f32
      %17 = vector.broadcast %cst : f32 to vector<8x128xf32>
      %18 = arith.mulf %16, %17 : vector<8x128xf32>
      %c0_8 = arith.constant 0 : index
      %c0_9 = arith.constant 0 : index
      %19 = vector.load %arg5[%c0_8, %c0_9] : memref<8x128xf32, #tpu.memory_space<vmem>>, vector<8x128xf32>
      tpu.vector_store %arg5[%c0_8, %c0_9], %18 {strides = array<i32>} : memref<8x128xf32, #tpu.memory_space<vmem>>, vector<8x128xf32>,
    } else {
    }
    return
  }
  func.func @transform_0(%arg0: i32, %arg1: i32) -> (i32, i32) {
    %c1_i32 = arith.constant 1 : i32
    %0 = arith.muli %arg0, %c1_i32 : i32
    %1 = arith.addi %0, %arg1 : i32
    %c0_i32 = arith.constant 0 : i32
    %2 = arith.minsi %1, %c0_i32 : i32
    %c0_i32_0 = arith.constant 0 : i32
    %c0_i32_1 = arith.constant 0 : i32
    return %2, %c0_i32_0 : i32, i32
  }
  func.func @transform_1(%arg0: i32, %arg1: i32) -> (i32, i32) {
    %c1_i32 = arith.constant 1 : i32
    %0 = arith.muli %arg0, %c1_i32 : i32
    %1 = arith.addi %0, %arg1 : i32
    %c0_i32 = arith.constant 0 : i32
    %2 = arith.minsi %1, %c0_i32 : i32
    %c0_i32_0 = arith.constant 0 : i32
    %c0_i32_1 = arith.constant 0 : i32
    return %2, %c0_i32_0 : i32, i32
  }
  func.func @transform_2(%arg0: i32, %arg1: i32) -> (i32, i32) {
    %c1_i32 = arith.constant 1 : i32
    %0 = arith.muli %arg0, %c1_i32 : i32
    %1 = arith.addi %0, %arg1 : i32
    %c0_i32 = arith.constant 0 : i32
    %2 = arith.minsi %1, %c0_i32 : i32
    %c0_i32_0 = arith.constant 0 : i32
    %c0_i32_1 = arith.constant 0 : i32
    return %2, %c0_i32_0 : i32, i32
  }
  func.func @transform_3(%arg0: i32, %arg1: i32) -> (i32, i32) {
    %c0_i32 = arith.constant 0 : i32
    %c0_i32_0 = arith.constant 0 : i32
    return %arg0, %c0_i32 : i32, i32
  }
}

</mosaic_0001>

<bundles_post_ra>
// kernel: tpu_custom_call.1
= control target key start
LH: loop header
LB: loop body
LE: loop exit
PB: predicated region body
PF: predicated region fallthrough
CT: control target
= control target key end

     0   :  { %8 = vsyncpa [#allocation3], 0  ;;  %s370_s0 = inlined_call_operand.hbm [shape: f32[16,128], index: 0, kind: input, shape index: {}]   ;;  %s371_s1 = inlined_call_operand.hbm [shape: f32[16,128], index: 1, kind: input, shape index: {}]   ;;  %s372_s2 = inlined_call_operand.hbm [shape: f32[16,128], index: 2, kind: input, shape index: {}]   ;;  %s373_s3 = inlined_call_operand.hbm [shape: f32[8,128], index: 3, kind: output, shape index: {}]  }
   0x1   :  { %9 = vsyncpa [#allocation6], 0 }
   0x2   :  { %10 = vsyncpa [#allocation4], 0  ;;  %s280_s12 = smov [#allocation5]   ;;  %s281_s14 = smov [#allocation2]  }
   0x3   :  { %s40_s13 = sshll.u32 %s280_s12, 4  ;;  %s22_s15 = sshll.u32 %s281_s14, 4  ;;  %s41_s13 = int_to_ptr.vmem [resolvable:$true] %s40_s13  ;;  %s306_s15 = int_to_ptr.vmem [resolvable:$true] %s22_s15 }
   0x4   :  { %s186_s18 = scalar_lea.hbm %s371_s1, 256 }
   0x5   :  { %p187_p0 = scmp.ne.s32.totalorder %s371_s1, %s186_s18  ;;  %p190_p1 = scmp.lt.u32.totalorder %s186_s18, %s371_s1 }
   0x7   :  { %p192_p2 = pnand %p190_p1, %p187_p0 }
   0x9   :  { %195 = shalt.err (!%p192_p2)
}
   0xa   :  { %s196_s23 = scalar_lea.vmem %s41_s13, 256  ;;  %p201_p4 = scmp.lt.s32.totalorder %s41_s13, %s41_s13 }
   0xb   :  { %p197_p3 = scmp.ne.s32.totalorder %s41_s13, %s196_s23  ;;  %p202_p5 = scmp.lt.s32.totalorder %s196_s23, %s196_s23 }
   0xd   :  { %p203_p6 = por %p202_p5, %p201_p4 }
   0xf   :  { %p204_p7 = pnand %p203_p6, %p197_p3 }
  0x11   :  { %207 = shalt.err (!%p204_p7)
}
  0x12   :  { %s282_s24 = smov 128   ;;  %s283_s25 = smov 8  }
  0x13   :  { %46 = dma.hbm_to_vmem [thread:$0]  %s371_s1, 256, %s41_s13, [#allocation6], %s282_s24, %s282_s24, %s283_s25  }
  0x14   :  { %s208_s30 = scalar_lea.hbm %s370_s0, 256 }
  0x15   :  { %p209_p8 = scmp.ne.s32.totalorder %s370_s0, %s208_s30  ;;  %p212_p9 = scmp.lt.u32.totalorder %s208_s30, %s370_s0 }
  0x17   :  { %p214_p10 = pnand %p212_p9, %p209_p8 }
  0x19   :  { %217 = shalt.err (!%p214_p10)
}
  0x1a   :  { %s218_s8 = scalar_lea.vmem %s306_s15, 256  ;;  %p223_p12 = scmp.lt.s32.totalorder %s306_s15, %s306_s15 }
  0x1b   :  { %p219_p11 = scmp.ne.s32.totalorder %s306_s15, %s218_s8  ;;  %p224_p13 = scmp.lt.s32.totalorder %s218_s8, %s218_s8 }
  0x1d   :  { %p225_p0 = por %p224_p13, %p223_p12 }
  0x1f   :  { %p226_p1 = pnand %p225_p0, %p219_p11 }
  0x21   :  { %229 = shalt.err (!%p226_p1)
}
  0x22   :  { %28 = dma.hbm_to_vmem [thread:$0]  %s370_s0, 256, %s306_s15, [#allocation3], %s282_s24, %s282_s24, %s283_s25  }
  0x23   :  { %s284_s10 = smov [#allocation7]   ;;  %s230_s14 = scalar_lea.hbm %s372_s2, 256 }
  0x24   :  { %s58_s11 = sshll.u32 %s284_s10, 4  ;;  %p231_p2 = scmp.ne.s32.totalorder %s372_s2, %s230_s14  ;;  %s59_s11 = int_to_ptr.vmem [resolvable:$true] %s58_s11 }
  0x25   :  { %p234_p3 = scmp.lt.u32.totalorder %s230_s14, %s372_s2 }
  0x27   :  { %p236_p4 = pnand %p234_p3, %p231_p2 }
  0x29   :  { %239 = shalt.err (!%p236_p4)
}
  0x2a   :  { %s240_s20 = scalar_lea.vmem %s59_s11, 256  ;;  %p245_p6 = scmp.lt.s32.totalorder %s59_s11, %s59_s11 }
  0x2b   :  { %p241_p5 = scmp.ne.s32.totalorder %s59_s11, %s240_s20  ;;  %p246_p7 = scmp.lt.s32.totalorder %s240_s20, %s240_s20 }
  0x2d   :  { %p247_p8 = por %p246_p7, %p245_p6 }
  0x2f   :  { %p248_p9 = pnand %p247_p8, %p241_p5 }
  0x31   :  { %251 = shalt.err (!%p248_p9)
}
  0x32   :  { %64 = dma.hbm_to_vmem [thread:$0]  %s372_s2, 256, %s59_s11, [#allocation6], %s282_s24, %s282_s24, %s283_s25  }
  0x33   :  { %274 = dma.done.wait [#allocation3], 256  }
  0x34   :  { %275 = vsyncadd [#allocation3], 4294967040 }
  0x35   :  { %276 = dma.done.wait [#allocation6], 512  }
  0x36   :  { %277 = vsyncadd [#allocation6], 4294966784  ;;  %v100_v0 = vld [vmem:[#allocation5] sm:$0xff]  ;;  %v101_v1 = vld [vmem:[#allocation5 + $0x8] sm:$0xff]  ;;  %s285_s2 = smov [#allocation8]  }
  0x37   :  { %v102_v2 = vld [vmem:[#allocation7] sm:$0xff]  ;;  %v103_v3 = vld [vmem:[#allocation7 + $0x8] sm:$0xff]  ;;  %s163_s21 = sshll.u32 %s285_s2, 4  ;;  %s164_s21 = int_to_ptr.vmem [resolvable:$true] %s163_s21 }
  0x38   :  { %v104_v4 = vsub.f32 %v100_v0, %v102_v2  ;;  %v105_v5 = vsub.f32 %v101_v1, %v103_v3  ;;  %v98_v6 = vld [vmem:[#allocation2] sm:$0xff]  ;;  %v99_v7 = vld [vmem:[#allocation2 + $0x8] sm:$0xff]  ;;  %s252_s22 = scalar_lea.vmem %s164_s21, 128  ;;  %p257_p11 = scmp.lt.s32.totalorder %s164_s21, %s164_s21 }
  0x39   :  { %p253_p10 = scmp.ne.s32.totalorder %s164_s21, %s252_s22  ;;  %p258_p12 = scmp.lt.s32.totalorder %s252_s22, %s252_s22 }
  0x3a   :  { %v106_v8 = vand.u32 2147483647, %v104_v4  ;;  %v107_v9 = vand.u32 2147483647, %v105_v5 }
  0x3b   :  { %p259_p13 = por %p258_p12, %p257_p11 }
  0x3c   :  { %v108_v10 = vsub.f32 %v98_v6, %v106_v8  ;;  %v109_v11 = vsub.f32 %v99_v7, %v107_v9 }
  0x3d   :  { %p260_p0 = pnand %p259_p13, %p253_p10 }
  0x3e   :  { %v110_v12 = vmul.f32 %v108_v10, %v108_v10  ;;  %v111_v13 = vmul.f32 %v109_v11, %v109_v11 }
  0x40   :  { %v112_v14 = vadd.f32 %v111_v13, %v110_v12 }
  0x42   :  { %v155_v15 = vmul.f32 0.00048828125, %v112_v14 }
  0x44   :  { %156 = vst [vmem:[#allocation8] sm:$0xff] %v155_v15 }
  0x45   :  { %263 = shalt.err (!%p260_p0)
}
  0x46   :  { %s264_s25 = scalar_lea.hbm %s373_s3, 128 }
  0x47   :  { %p265_p1 = scmp.ne.s32.totalorder %s373_s3, %s264_s25  ;;  %p268_p2 = scmp.lt.u32.totalorder %s264_s25, %s373_s3 }
  0x49   :  { %p270_p3 = pnand %p268_p2, %p265_p1 }
  0x4b   :  { %273 = shalt.err (!%p270_p3)
}
  0x4c   :  { %166 = dma.vmem_to_hbm [thread:$0]  %s164_s21, 128, %s373_s3, [#allocation4]  }
  0x4d   :  { %278 = dma.done.wait [#allocation4], 128  }
  0x4e   :  { %279 = vsyncadd [#allocation4], 4294967168 }
  0x4f   :  { %170 = vsyncpa [#allocation3], 1 }
  0x50   :  { %171 = vsyncpa [#allocation6], 1 }
  0x51   :  { %172 = vsyncpa [#allocation4], 1 }

</bundles_post_ra>
